<compile_context>
chip_gen: v6e
topology: v6e:2x2x1
jax: 0.10.0
libtpu: 0.0.40
codegen_flags: <defaults>
</compile_context>

<pallas_src>
import functools

import jax
import jax.numpy as jnp
from jax import lax
from jax.experimental import pallas as pl
from jax.experimental.pallas import tpu as pltpu


# ---------------------------------------------------------------------------
# Single-step GRU cell (exactly MyGRUCell.forward) -- one fused MXU push.
# ---------------------------------------------------------------------------
def gru_cell_kernel(xh_ref, h_ref, w_ref, b_ref, out_ref):
    """One GRU step with a single block-matrix matmul.

    xh : [B, I+H]   = concat(x, h_prev)
    w  : [I+H, 4H]  block matrix:
           cols [0 , 2H): rows 0:I = [Wiz|Wir], rows I: = [Whz|Whr]
           cols [2H, 3H): rows 0:I =  Wig,      rows I: =  0
           cols [3H, 4H): rows 0:I =  0,        rows I: =  Whg
    b  : [1, 4H]    = [biz+bhz, bir+bhr, big, bhg]
    One MXU push yields the z/r preactivations already summed, plus xi_g and
    (hh_g + bhg), all in lane-aligned slices (H = 128 -> slices are free).
    """
    H = out_ref.shape[1]
    acts = jnp.dot(xh_ref[...].astype(jnp.float32), w_ref[...],
                   preferred_element_type=jnp.float32) + b_ref[...]
    zr = jax.nn.sigmoid(acts[:, : 2 * H])        # z and r share one EUP pass
    z = zr[:, :H]
    r = zr[:, H: 2 * H]
    g = jnp.tanh(acts[:, 2 * H: 3 * H] + r * acts[:, 3 * H:])
    h = h_ref[...].astype(jnp.float32)
    # (1 - z) * g + z * h  ==  g + z * (h - g)
    out_ref[...] = (g + z * (h - g)).astype(out_ref.dtype)


def gru_cell(x, h_prev, cell_fused):
    """One GRU time step. x: [B, I], h_prev: [B, H] -> h_new: [B, H]."""
    w_comb, b_comb = cell_fused
    B, H = h_prev.shape
    xh = jnp.concatenate([x, h_prev], axis=1)        # [B, I+H] (outside kernel)
    args = (xh, h_prev, w_comb, b_comb)
    # ~400 KiB of operands: fully VMEM-resident, single grid point.
    return pl.pallas_call(
        gru_cell_kernel,
        out_shape=jax.ShapeDtypeStruct((B, H), x.dtype),
        in_specs=[pl.BlockSpec(memory_space=pltpu.VMEM) for _ in args],
        out_specs=pl.BlockSpec(memory_space=pltpu.VMEM),
    )(*args)


# ---------------------------------------------------------------------------
# Fused sequence kernel: T GRU steps in one pallas_call.
# ---------------------------------------------------------------------------
def gru_seq_kernel(x_ref, h0_ref, wi_ref, wh_ref, bx_ref, bhg_ref,
                   out_ref, h_carry, xi_buf, *, steps_per_block, batch):
    """Process one block of `steps_per_block` timesteps.

    x_ref  : [TB*B, I]   time-block of inputs (time/batch merged into rows)
    wi     : [I, 3H]     = concat(Wiz, Wir, Wig)
    wh     : [H, 3H]     = concat(Whz, Whr, Whg)
    bx     : [1, 3H]     = [biz+bhz, bir+bhr, big]
    bhg    : [1, H]      hidden-side bias of g (kept separate: scaled by r)
    out    : [TB*B, H]   hidden-state history for this block
    h_carry: [B, H] f32  VMEM scratch, carried across grid steps (never in HBM)
    xi_buf : [TB*B, 3H]  VMEM scratch for the hoisted input projection
    """
    H = h0_ref.shape[1]
    TB, B = steps_per_block, batch

    @pl.when(pl.program_id(0) == 0)
    def _():
        h_carry[...] = h0_ref[...].astype(jnp.float32)

    # Hoisted input projection: one MXU push with M = TB*B rows instead of
    # TB tiny pushes with M = B rows inside the recurrence.
    xi_buf[...] = (
        jnp.dot(x_ref[...].astype(jnp.float32), wi_ref[...],
                preferred_element_type=jnp.float32)
        + bx_ref[...])

    wh = wh_ref[...]
    bhg = bhg_ref[...]

    def step(t, h):
        row = pl.multiple_of(t * B, B)               # sublane-aligned offset
        xi_t = xi_buf[pl.ds(row, B), :]
        hh = jnp.dot(h, wh, preferred_element_type=jnp.float32)
        zr = jax.nn.sigmoid(xi_t[:, : 2 * H] + hh[:, : 2 * H])
        z = zr[:, :H]
        r = zr[:, H: 2 * H]
        g = jnp.tanh(xi_t[:, 2 * H:] + r * (hh[:, 2 * H:] + bhg))
        h_new = g + z * (h - g)
        out_ref[pl.ds(row, B), :] = h_new.astype(out_ref.dtype)
        return h_new

    h_carry[...] = lax.fori_loop(0, TB, step, h_carry[...], unroll=True)


def gru_sequence(x_seq, h0, seq_fused, *, steps_per_block=16):
    """Run the GRU cell over a full sequence in a single pallas_call.

    x_seq: [T, B, I], h0: [B, H] -> h_seq: [T, B, H] (h_seq[t] = h after step t)
    """
    T, B, I = x_seq.shape
    H = h0.shape[1]
    wi, wh, bx, bhg = seq_fused
    TB = steps_per_block
    assert T % TB == 0, "sequence length must be a multiple of steps_per_block"
    x2d = x_seq.reshape(T * B, I)      # merge time/batch into MXU rows

    kernel = functools.partial(gru_seq_kernel, steps_per_block=TB, batch=B)
    grid_spec = pltpu.PrefetchScalarGridSpec(
        num_scalar_prefetch=0,
        grid=(T // TB,),
        in_specs=[
            pl.BlockSpec((TB * B, I), lambda t: (t, 0)),   # x: streamed per block
            pl.BlockSpec((B, H), lambda t: (0, 0)),        # h0: fetched once
            pl.BlockSpec((I, 3 * H), lambda t: (0, 0)),    # Wi: resident in VMEM
            pl.BlockSpec((H, 3 * H), lambda t: (0, 0)),    # Wh: resident in VMEM
            pl.BlockSpec((1, 3 * H), lambda t: (0, 0)),    # bx: resident
            pl.BlockSpec((1, H), lambda t: (0, 0)),        # bhg: resident
        ],
        out_specs=pl.BlockSpec((TB * B, H), lambda t: (t, 0)),
        scratch_shapes=[
            pltpu.VMEM((B, H), jnp.float32),               # hidden-state carry
            pltpu.VMEM((TB * B, 3 * H), jnp.float32),      # hoisted projections
        ],
    )
    h2d = pl.pallas_call(
        kernel,
        out_shape=jax.ShapeDtypeStruct((T * B, H), x_seq.dtype),
        grid_spec=grid_spec,
        compiler_params=pltpu.CompilerParams(
            dimension_semantics=("arbitrary",)),           # h carries across blocks
    )(x2d, h0, wi, wh, bx, bhg)
    return h2d.reshape(T, B, H)


# ---------------------------------------------------------------------------
# Parameter fusion (done once, outside the hot path).
# ---------------------------------------------------------------------------
def fuse_params_cell(p):
    """Block weight/bias for the single-matmul one-step kernel."""
    I, H = p["Wiz"].shape
    dt = p["Wiz"].dtype
    top = jnp.concatenate(
        [p["Wiz"], p["Wir"], p["Wig"], jnp.zeros((I, H), dt)], axis=1)    # [I, 4H]
    bot = jnp.concatenate(
        [p["Whz"], p["Whr"], jnp.zeros((H, H), dt), p["Whg"]], axis=1)    # [H, 4H]
    w_comb = jnp.concatenate([top, bot], axis=0)                          # [I+H, 4H]
    b_comb = jnp.concatenate(
        [p["biz"] + p["bhz"], p["bir"] + p["bhr"], p["big"], p["bhg"]], axis=1)
    return w_comb, b_comb


def fuse_params_seq(p):
    """Gate-concatenated weights for the fused sequence kernel."""
    wi = jnp.concatenate([p["Wiz"], p["Wir"], p["Wig"]], axis=1)          # [I, 3H]
    wh = jnp.concatenate([p["Whz"], p["Whr"], p["Whg"]], axis=1)          # [H, 3H]
    bx = jnp.concatenate(
        [p["biz"] + p["bhz"], p["bir"] + p["bhr"], p["big"]], axis=1)     # [1, 3H]
    return wi, wh, bx, p["bhg"]


def init_params(key, input_size, hidden_size, dtype=jnp.float32):
    """Deterministic init mirroring nn.Linear shapes; weights pre-transposed
    to [in_features, out_features]."""
    names = [("Wiz", input_size), ("Wir", input_size), ("Wig", input_size),
             ("Whz", hidden_size), ("Whr", hidden_size), ("Whg", hidden_size)]
    params = {}
    for name, fan_in in names:
        key, kw, kb = jax.random.split(key, 3)
        bound = 1.0 / jnp.sqrt(fan_in)
        params[name] = jax.random.uniform(
            kw, (fan_in, hidden_size), dtype, -bound, bound)
        params["b" + name[1:].lower()] = jax.random.uniform(
            kb, (1, hidden_size), dtype, -bound, bound)
    return params


# ---------------------------------------------------------------------------
# Pure-JAX references (same math as the PyTorch module).
# ---------------------------------------------------------------------------
def gru_cell_ref(x, h_prev, p):
    z = jax.nn.sigmoid(x @ p["Wiz"] + p["biz"] + h_prev @ p["Whz"] + p["bhz"])
    r = jax.nn.sigmoid(x @ p["Wir"] + p["bir"] + h_prev @ p["Whr"] + p["bhr"])
    g = jnp.tanh(x @ p["Wig"] + p["big"] + r * (h_prev @ p["Whg"] + p["bhg"]))
    return (1.0 - z) * g + z * h_prev


def gru_sequence_ref(x_seq, h0, p):
    def step(h, x):
        h_new = gru_cell_ref(x, h, p)
        return h_new, h_new
    _, hs = lax.scan(step, h0, x_seq)
    return hs


if __name__ == "__main__":
    batch_size, input_size, hidden_size = 8, 64, 128
    seq_len, steps_per_block = 32, 16

    key = jax.random.PRNGKey(0)
    kx, kh, kp = jax.random.split(key, 3)
    x_seq = jax.random.normal(kx, (seq_len, batch_size, input_size), jnp.float32)
    h0 = jax.random.normal(kh, (batch_size, hidden_size), jnp.float32)
    params = init_params(kp, input_size, hidden_size)

    cell_fused = fuse_params_cell(params)
    seq_fused = fuse_params_seq(params)

    # --- single step (the module's exact forward) --------------------------
    x0 = x_seq[0]
    h1 = jax.block_until_ready(jax.jit(gru_cell)(x0, h0, cell_fused))
    h1_ref = gru_cell_ref(x0, h0, params)
    assert h1.shape == (batch_size, hidden_size)
    assert jnp.allclose(h1, h1_ref, atol=1e-5, rtol=1e-5)

    # --- fused sequence: all T steps in one pallas_call ---------------------
    seq_fn = jax.jit(functools.partial(gru_sequence,
                                       steps_per_block=steps_per_block))
    h_seq = jax.block_until_ready(seq_fn(x_seq, h0, seq_fused))
    h_seq_ref = gru_sequence_ref(x_seq, h0, params)
    assert h_seq.shape == (seq_len, batch_size, hidden_size)
    # f32 rounding differences accumulate over T recurrent steps -> slightly
    # looser tolerance than the single-step check.
    assert jnp.allclose(h_seq, h_seq_ref, atol=1e-4, rtol=1e-4)

    print("KERNEL_OK")
</pallas_src>

<mosaic_0001>
module attributes {stable_mosaic.version = 11 : i64} {
  func.func @gru_cell_kernel(%arg0: memref<8x192xf32, #tpu.memory_space<vmem>>, %arg1: memref<8x128xf32, #tpu.memory_space<vmem>>, %arg2: memref<192x512xf32, #tpu.memory_space<vmem>>, %arg3: memref<1x512xf32, #tpu.memory_space<vmem>>, %arg4: memref<8x128xf32, #tpu.memory_space<vmem>>) attributes {dimension_semantics = [], scalar_prefetch = 0 : i64, scratch_operands = 0 : i64, tpu.core_type = #tpu.core_type<tc>} {
    %c0 = arith.constant 0 : index
    %c0_0 = arith.constant 0 : index
    %0 = vector.load %arg0[%c0, %c0_0] : memref<8x192xf32, #tpu.memory_space<vmem>>, vector<8x192xf32>
    %c0_1 = arith.constant 0 : index
    %c0_2 = arith.constant 0 : index
    %1 = vector.load %arg2[%c0_1, %c0_2] : memref<192x512xf32, #tpu.memory_space<vmem>>, vector<192x512xf32>
    %cst = arith.constant dense<0.000000e+00> : vector<8x512xf32>
    %2 = tpu.matmul %0, %1, %cst {dimension_numbers = #tpu.dot_dimension_numbers<[1], [0], [0], [1], [0, 0, 1, 1], [], []>} : vector<8x192xf32>, vector<192x512xf32>, vector<8x512xf32> -> vector<8x512xf32>
    %c0_3 = arith.constant 0 : index
    %c0_4 = arith.constant 0 : index
    %3 = vector.load %arg3[%c0_3, %c0_4] : memref<1x512xf32, #tpu.memory_space<vmem>>, vector<1x512xf32>
    %4 = vector.broadcast %3 : vector<1x512xf32> to vector<8x512xf32>
    %5 = arith.addf %2, %4 : vector<8x512xf32>
    %6 = vector.extract_strided_slice %5 {offsets = [0, 0], sizes = [8, 256], strides = [1, 1]} : vector<8x512xf32> to vector<8x256xf32>
    %7 = arith.negf %6 : vector<8x256xf32>
    %8 = math.exp %7 : vector<8x256xf32>
    %cst_5 = arith.constant 1.000000e+00 : f32
    %9 = vector.broadcast %cst_5 : f32 to vector<8x256xf32>
    %10 = arith.addf %9, %8 : vector<8x256xf32>
    %11 = arith.divf %9, %10 : vector<8x256xf32>
    %12 = vector.extract_strided_slice %11 {offsets = [0, 0], sizes = [8, 128], strides = [1, 1]} : vector<8x256xf32> to vector<8x128xf32>
    %13 = vector.extract_strided_slice %11 {offsets = [0, 128], sizes = [8, 128], strides = [1, 1]} : vector<8x256xf32> to vector<8x128xf32>
    %14 = vector.extract_strided_slice %5 {offsets = [0, 256], sizes = [8, 128], strides = [1, 1]} : vector<8x512xf32> to vector<8x128xf32>
    %15 = vector.extract_strided_slice %5 {offsets = [0, 384], sizes = [8, 128], strides = [1, 1]} : vector<8x512xf32> to vector<8x128xf32>
    %16 = arith.mulf %13, %15 : vector<8x128xf32>
    %17 = arith.addf %14, %16 : vector<8x128xf32>
    %18 = math.tanh %17 : vector<8x128xf32>
    %c0_6 = arith.constant 0 : index
    %c0_7 = arith.constant 0 : index
    %19 = vector.load %arg1[%c0_6, %c0_7] : memref<8x128xf32, #tpu.memory_space<vmem>>, vector<8x128xf32>
    %20 = arith.subf %19, %18 : vector<8x128xf32>
    %21 = arith.mulf %12, %20 : vector<8x128xf32>
    %22 = arith.addf %18, %21 : vector<8x128xf32>
    %c0_8 = arith.constant 0 : index
    %c0_9 = arith.constant 0 : index
    %23 = vector.load %arg4[%c0_8, %c0_9] : memref<8x128xf32, #tpu.memory_space<vmem>>, vector<8x128xf32>
    tpu.vector_store %arg4[%c0_8, %c0_9], %22 {strides = array<i32>} : memref<8x128xf32, #tpu.memory_space<vmem>>, vector<8x128xf32>,
    return
  }
}

</mosaic_0001>

<bundles_post_ra>
// kernel: gru_cell.1
= control target key start
LH: loop header
LB: loop body
LE: loop exit
PB: predicated region body
PF: predicated region fallthrough
CT: control target
= control target key end

     0   :  { %9 = vsyncpa [#allocation3], 0  ;;  %s448_s0 = inlined_call_operand.vmem [shape: f32[8,192], index: 0, kind: input, shape index: {}]   ;;  %s449_s1 = inlined_call_operand.vmem [shape: f32[8,128], index: 1, kind: input, shape index: {}]   ;;  %s450_s2 = inlined_call_operand.hbm [shape: f32[192,512], index: 2, kind: input, shape index: {}]   ;;  %s451_s3 = inlined_call_operand.vmem [shape: f32[1,512], index: 3, kind: input, shape index: {}]   ;;  %s452_s4 = inlined_call_operand.hbm [shape: f32[8,128], index: 4, kind: output, shape index: {}]  }
   0x1   :  { %10 = vsyncpa [#allocation4], 0  ;;  %s395_s15 = smov [#allocation2]  }
   0x2   :  { %s20_s16 = sshll.u32 %s395_s15, 4  ;;  %s21_s16 = int_to_ptr.vmem [resolvable:$true] %s20_s16 }
   0x3   :  { %s359_s17 = scalar_lea.vmem %s21_s16, 12288  ;;  %p364_p1 = scmp.lt.s32.totalorder %s21_s16, %s21_s16 }
   0x4   :  { %p360_p0 = scmp.ne.s32.totalorder %s21_s16, %s359_s17  ;;  %p365_p2 = scmp.lt.s32.totalorder %s359_s17, %s359_s17 }
   0x6   :  { %p366_p3 = por %p365_p2, %p364_p1 }
   0x8   :  { %p367_p4 = pnand %p366_p3, %p360_p0 }
   0xa   :  { %370 = shalt.err (!%p367_p4)
}
   0xb   :  { %s396_s18 = smov 512   ;;  %s397_s19 = smov 32  }
   0xc   :  { %26 = dma.hbm_to_vmem [thread:$0]  %s450_s2, 12288, %s21_s16, [#allocation3], %s396_s18, %s396_s18, %s397_s19  }
   0xd   :  { %391 = dma.done.wait [#allocation3], 12288  }
   0xe   :  { %392 = vsyncadd [#allocation3], 4294955008  ;;  %v95_v0 = vld [vmem:[#allocation2 + $0x1e8] sm:$0xff]  ;;  %v94_v1 = vld [vmem:[#allocation2 + $0x1e0] sm:$0xff]  ;;  %vm152_vm0 = vcmask 523264   ;;  %s398_s27 = smov [#allocation5]  }
   0xf   :  { %v91_v2 = vld [vmem:[#allocation2 + $0x1c8] sm:$0xff]  ;;  %156 = vmatprep.subr.mxu0 %v95_v0  ;;  %v90_v3 = vld [vmem:[#allocation2 + $0x1c0] sm:$0xff]  ;;  %v97_v13 = vld [vmem:[#allocation2 + $0x1f8] sm:$0xff]  ;;  %s324_s28 = sshll.u32 %s398_s27, 4  ;;  %s325_s28 = int_to_ptr.vmem [resolvable:$true] %s324_s28 }
  0x10   :  { %157 = vmatpush1.msra.mxu0 %v94_v1  ;;  %v87_v4 = vld [vmem:[#allocation2 + $0x1a8] sm:$0xff]  ;;  %v86_v5 = vld [vmem:[#allocation2 + $0x1a0] sm:$0xff]  ;;  %227 = vmatprep.subr.mxu1 %v97_v13  ;;  %v96_v15 = vld [vmem:[#allocation2 + $0x1f0] sm:$0xff]  ;;  %s371_s29 = scalar_lea.vmem %s325_s28, 128  ;;  %p376_p6 = scmp.lt.s32.totalorder %s325_s28, %s325_s28 }
  0x11   :  { %158 = vmatprep.subr.mxu0 %v91_v2  ;;  %v83_v6 = vld [vmem:[#allocation2 + $0x188] sm:$0xff]  ;;  %v82_v7 = vld [vmem:[#allocation2 + $0x180] sm:$0xff]  ;;  %v93_v16 = vld [vmem:[#allocation2 + $0x1d8] sm:$0xff]  ;;  %228 = vmatpush1.msra.mxu1 %v96_v15  ;;  %p372_p5 = scmp.ne.s32.totalorder %s325_s28, %s371_s29  ;;  %p377_p7 = scmp.lt.s32.totalorder %s371_s29, %s371_s29 }
  0x12   :  { %159 = vmatpush1.msra.mxu0 %v90_v3  ;;  %v79_v8 = vld [vmem:[#allocation2 + $0x168] sm:$0xff]  ;;  %v78_v9 = vld [vmem:[#allocation2 + $0x160] sm:$0xff]  ;;  %v92_v18 = vld [vmem:[#allocation2 + $0x1d0] sm:$0xff]  ;;  %229 = vmatprep.subr.mxu1 %v93_v16 }
  0x13   :  { %160 = vmatprep.subr.mxu0 %v87_v4  ;;  %v75_v10 = vld [vmem:[#allocation2 + $0x148] sm:$0xff]  ;;  %v74_v11 = vld [vmem:[#allocation2 + $0x140] sm:$0xff]  ;;  %v89_v20 = vld [vmem:[#allocation2 + $0x1b8] sm:$0xff]  ;;  %230 = vmatpush1.msra.mxu1 %v92_v18  ;;  %p378_p8 = por %p377_p7, %p376_p6 }
  0x14   :  { %161 = vmatpush1.msra.mxu0 %v86_v5  ;;  %v71_v12 = vld [vmem:[#allocation2 + $0x128] sm:$0xff]  ;;  %v70_v14 = vld [vmem:[#allocation2 + $0x120] sm:$0xff]  ;;  %v88_v21 = vld [vmem:[#allocation2 + $0x1b0] sm:$0xff]  ;;  %231 = vmatprep.subr.mxu1 %v89_v20 }
  0x15   :  { %162 = vmatprep.subr.mxu0 %v83_v6  ;;  %v67_v17 = vld [vmem:[#allocation2 + $0x108] sm:$0xff]  ;;  %v66_v19 = vld [vmem:[#allocation2 + $0x100] sm:$0xff]  ;;  %v85_v23 = vld [vmem:[#allocation2 + $0x198] sm:$0xff]  ;;  %232 = vmatpush1.msra.mxu1 %v88_v21  ;;  %p379_p9 = pnand %p378_p8, %p372_p5 }
  0x16   :  { %163 = vmatpush1.msra.mxu0 %v82_v7  ;;  %v63_v22 = vld [vmem:[#allocation2 + $0xe8] sm:$0xff]  ;;  %v62_v24 = vld [vmem:[#allocation2 + $0xe0] sm:$0xff]  ;;  %v84_v25 = vld [vmem:[#allocation2 + $0x190] sm:$0xff]  ;;  %233 = vmatprep.subr.mxu1 %v85_v23 }
  0x17   :  { %164 = vmatprep.subr.mxu0 %v79_v8  ;;  %v59_v26 = vld [vmem:[#allocation2 + $0xc8] sm:$0xff]  ;;  %v81_v27 = vld [vmem:[#allocation2 + $0x178] sm:$0xff]  ;;  %v58_v28 = vld [vmem:[#allocation2 + $0xc0] sm:$0xff]  ;;  %234 = vmatpush1.msra.mxu1 %v84_v25 }
  0x18   :  { %165 = vmatpush1.msra.mxu0 %v78_v9  ;;  %v80_v29 = vld [vmem:[#allocation2 + $0x170] sm:$0xff]  ;;  %v55_v30 = vld [vmem:[#allocation2 + $0xa8] sm:$0xff]  ;;  %v77_v31 = vld [vmem:[#allocation2 + $0x158] sm:$0xff]  ;;  %235 = vmatprep.subr.mxu1 %v81_v27 }
  0x19   :  { %166 = vmatprep.subr.mxu0 %v75_v10  ;;  %v54_v32 = vld [vmem:[#allocation2 + $0xa0] sm:$0xff]  ;;  %v76_v33 = vld [vmem:[#allocation2 + $0x150] sm:$0xff]  ;;  %v51_v34 = vld [vmem:[#allocation2 + $0x88] sm:$0xff]  ;;  %236 = vmatpush1.msra.mxu1 %v80_v29 }
  0x1a   :  { %167 = vmatpush1.msra.mxu0 %v74_v11  ;;  %v73_v35 = vld [vmem:[#allocation2 + $0x138] sm:$0xff]  ;;  %v50_v36 = vld [vmem:[#allocation2 + $0x80] sm:$0xff]  ;;  %237 = vmatprep.subr.mxu1 %v77_v31  ;;  %v72_v37 = vld [vmem:[#allocation2 + $0x130] sm:$0xff] }
  0x1b   :  { %168 = vmatprep.subr.mxu0 %v71_v12  ;;  %v47_v38 = vld [vmem:[#allocation2 + $0x68] sm:$0xff]  ;;  %238 = vmatpush1.msra.mxu1 %v76_v33  ;;  %v69_v39 = vld [vmem:[#allocation2 + $0x118] sm:$0xff]  ;;  %v46_v40 = vld [vmem:[#allocation2 + $0x60] sm:$0xff] }
  0x1c   :  { %169 = vmatpush1.msra.mxu0 %v70_v14  ;;  %239 = vmatprep.subr.mxu1 %v73_v35  ;;  %v68_v41 = vld [vmem:[#allocation2 + $0x110] sm:$0xff]  ;;  %v43_v42 = vld [vmem:[#allocation2 + $0x48] sm:$0xff]  ;;  %v65_v43 = vld [vmem:[#allocation2 + $0xf8] sm:$0xff] }
  0x1d   :  { %170 = vmatprep.subr.mxu0 %v67_v17  ;;  %240 = vmatpush1.msra.mxu1 %v72_v37  ;;  %v42_v44 = vld [vmem:[#allocation2 + $0x40] sm:$0xff]  ;;  %v430_v45 = vld [vmem:[%s448_s0 + $0x8] sm:$0xff]  ;;  %v64_v47 = vld [vmem:[#allocation2 + $0xf0] sm:$0xff] }
  0x1e   :  { %171 = vmatpush1.msra.mxu0 %v66_v19  ;;  %241 = vmatprep.subr.mxu1 %v69_v39  ;;  %v39_v46 = vld [vmem:[#allocation2 + $0x28] sm:$0xff]  ;;  %v38_v48 = vld [vmem:[#allocation2 + $0x20] sm:$0xff]  ;;  %v61_v49 = vld [vmem:[#allocation2 + $0xd8] sm:$0xff] }
  0x1f   :  { %172 = vmatprep.subr.mxu0 %v63_v22  ;;  %242 = vmatpush1.msra.mxu1 %v68_v41  ;;  %v35_v50 = vld [vmem:[#allocation2 + $0x8] sm:$0xff]  ;;  %v60_v51 = vld [vmem:[#allocation2 + $0xd0] sm:$0xff]  ;;  %v34_v52 = vld [vmem:[#allocation2] sm:$0xff] }
  0x20   :  { %173 = vmatpush1.msra.mxu0 %v62_v24  ;;  %243 = vmatprep.subr.mxu1 %v65_v43  ;;  %v57_v53 = vld [vmem:[#allocation2 + $0xb8] sm:$0xff]  ;;  %v127_v54 = vld [vmem:[#allocation2 + $0x2e8] sm:$0xff]  ;;  %v56_v55 = vld [vmem:[#allocation2 + $0xb0] sm:$0xff] }
  0x21   :  { %174 = vmatprep.subr.mxu0 %v59_v26  ;;  %333 = vmatprep.mubr.msk.f32.mxu0 %vm152_vm0, %v430_v45  ;;  %v126_v56 = vld [vmem:[#allocation2 + $0x2e0] sm:$0xff]  ;;  %v53_v57 = vld [vmem:[#allocation2 + $0x98] sm:$0xff]  ;;  %v123_v58 = vld [vmem:[#allocation2 + $0x2c8] sm:$0xff] }
  0x22   :  { %175 = vmatpush1.msra.mxu0 %v58_v28  ;;  %244 = vmatpush1.msra.mxu1 %v64_v47  ;;  %v52_v59 = vld [vmem:[#allocation2 + $0x90] sm:$0xff]  ;;  %v122_v60 = vld [vmem:[#allocation2 + $0x2c0] sm:$0xff]  ;;  %v49_v61 = vld [vmem:[#allocation2 + $0x78] sm:$0xff] }
  0x23   :  { %176 = vmatprep.subr.mxu0 %v55_v30  ;;  %245 = vmatprep.subr.mxu1 %v61_v49  ;;  %v119_v62 = vld [vmem:[#allocation2 + $0x2a8] sm:$0xff]  ;;  %v48_v63 = vld [vmem:[#allocation2 + $0x70] sm:$0xff]  ;;  %v118_v0 = vld [vmem:[#allocation2 + $0x2a0] sm:$0xff] }
  0x24   :  { %177 = vmatpush1.msra.mxu0 %v54_v32  ;;  %246 = vmatpush1.msra.mxu1 %v60_v51  ;;  %v45_v1 = vld [vmem:[#allocation2 + $0x58] sm:$0xff]  ;;  %v115_v2 = vld [vmem:[#allocation2 + $0x288] sm:$0xff]  ;;  %v44_v3 = vld [vmem:[#allocation2 + $0x50] sm:$0xff] }
  0x25   :  { %178 = vmatprep.subr.mxu0 %v51_v34  ;;  %247 = vmatprep.subr.mxu1 %v57_v53  ;;  %v114_v4 = vld [vmem:[#allocation2 + $0x280] sm:$0xff]  ;;  %v41_v5 = vld [vmem:[#allocation2 + $0x38] sm:$0xff]  ;;  %v111_v6 = vld [vmem:[#allocation2 + $0x268] sm:$0xff]  ;;  %v132_v34 = vlaneseq }
  0x26   :  { %179 = vmatpush1.msra.mxu0 %v50_v36  ;;  %248 = vmatpush1.msra.mxu1 %v56_v55  ;;  %v40_v7 = vld [vmem:[#allocation2 + $0x30] sm:$0xff]  ;;  %v110_v8 = vld [vmem:[#allocation2 + $0x260] sm:$0xff]  ;;  %v37_v9 = vld [vmem:[#allocation2 + $0x18] sm:$0xff] }
  0x27   :  { %180 = vmatprep.subr.mxu0 %v47_v38  ;;  %249 = vmatprep.subr.mxu1 %v53_v57  ;;  %v107_v10 = vld [vmem:[#allocation2 + $0x248] sm:$0xff]  ;;  %v36_v11 = vld [vmem:[#allocation2 + $0x10] sm:$0xff]  ;;  %v106_v12 = vld [vmem:[#allocation2 + $0x240] sm:$0xff]  ;;  %v133_v35 = vshrl.u32 %v132_v34, 7 }
  0x28   :  { %181 = vmatpush1.msra.mxu0 %v46_v40  ;;  %250 = vmatpush1.msra.mxu1 %v52_v59  ;;  %v129_v13 = vld [vmem:[#allocation2 + $0x2f8] sm:$0xff]  ;;  %v103_v14 = vld [vmem:[#allocation2 + $0x228] sm:$0xff]  ;;  %v128_v15 = vld [vmem:[#allocation2 + $0x2f0] sm:$0xff] }
  0x29   :  { %182 = vmatprep.subr.mxu0 %v43_v42  ;;  %251 = vmatprep.subr.mxu1 %v49_v61  ;;  %v102_v16 = vld [vmem:[#allocation2 + $0x220] sm:$0xff]  ;;  %v125_v17 = vld [vmem:[#allocation2 + $0x2d8] sm:$0xff]  ;;  %v99_v18 = vld [vmem:[#allocation2 + $0x208] sm:$0xff]  ;;  %v138_v36 = vsub.s32 1, %v133_v35  ;;  %v134_v43 = vsub.s32 0, %v133_v35  ;;  %v146_v49 = vsub.s32 3, %v133_v35 }
  0x2a   :  { %183 = vmatpush1.msra.mxu0 %v42_v44  ;;  %252 = vmatpush1.msra.mxu1 %v48_v63  ;;  %v124_v19 = vld [vmem:[#allocation2 + $0x2d0] sm:$0xff]  ;;  %v98_v20 = vld [vmem:[#allocation2 + $0x200] sm:$0xff]  ;;  %v121_v21 = vld [vmem:[#allocation2 + $0x2b8] sm:$0xff]  ;;  %v142_v51 = vsub.s32 2, %v133_v35 }
  0x2b   :  { %184 = vmatprep.subr.mxu0 %v39_v46  ;;  %253 = vmatprep.subr.mxu1 %v45_v1  ;;  %v32_v22 = vld [vmem:[%s448_s0] sm:$0xff]  ;;  %v120_v23 = vld [vmem:[#allocation2 + $0x2b0] sm:$0xff]  ;;  %v117_v24 = vld [vmem:[#allocation2 + $0x298] sm:$0xff] }
  0x2c   :  { %185 = vmatpush1.msra.mxu0 %v38_v48  ;;  %254 = vmatpush1.msra.mxu1 %v44_v3  ;;  %v116_v25 = vld [vmem:[#allocation2 + $0x290] sm:$0xff]  ;;  %v113_v26 = vld [vmem:[#allocation2 + $0x278] sm:$0xff]  ;;  %v130_v37 = vld [vmem:[%s451_s3] sm:$0xf] }
  0x2d   :  { %186 = vmatprep.subr.mxu0 %v35_v50  ;;  %255 = vmatprep.subr.mxu1 %v41_v5  ;;  %v112_v27 = vld [vmem:[#allocation2 + $0x270] sm:$0xff]  ;;  %v109_v28 = vld [vmem:[#allocation2 + $0x258] sm:$0xff]  ;;  %v139_v38 = vrot.slane %v130_v37, %v138_v36  ;;  %v135_v44 = vrot.slane %v130_v37, %v134_v43 }
  0x2e   :  { %187 = vmatpush1.msra.mxu0 %v34_v52  ;;  %256 = vmatpush1.msra.mxu1 %v40_v7  ;;  %v108_v29 = vld [vmem:[#allocation2 + $0x250] sm:$0xff]  ;;  %v105_v30 = vld [vmem:[#allocation2 + $0x238] sm:$0xff]  ;;  %v147_v52 = vrot.slane %v130_v37, %v146_v49 }
  0x2f   :  { %204 = vmatprep.subr.mxu0 %v127_v54  ;;  %257 = vmatprep.subr.mxu1 %v37_v9  ;;  %v104_v31 = vld [vmem:[#allocation2 + $0x230] sm:$0xff]  ;;  %v101_v32 = vld [vmem:[#allocation2 + $0x218] sm:$0xff]  ;;  %v143_v54 = vrot.slane %v130_v37, %v142_v51 }
  0x30   :  { %205 = vmatpush2.msra.mxu0 %v126_v56  ;;  %258 = vmatpush1.msra.mxu1 %v36_v11  ;;  %v100_v33 = vld [vmem:[#allocation2 + $0x210] sm:$0xff] }
  0x31   :  { %206 = vmatprep.subr.mxu0 %v123_v58  ;;  %275 = vmatprep.subr.mxu1 %v129_v13 }
  0x32   :  { %207 = vmatpush2.msra.mxu0 %v122_v60  ;;  %276 = vmatpush2.msra.mxu1 %v128_v15 }
  0x33   :  { %208 = vmatprep.subr.mxu0 %v119_v62  ;;  %277 = vmatprep.subr.mxu1 %v125_v17  ;;  %v313_v62 = vld [vmem:[%s449_s1] sm:$0xff] }
  0x34   :  { %209 = vmatpush2.msra.mxu0 %v118_v0  ;;  %278 = vmatpush2.msra.mxu1 %v124_v19 }
  0x35   :  { %210 = vmatprep.subr.mxu0 %v115_v2  ;;  %279 = vmatprep.subr.mxu1 %v121_v21 }
  0x36   :  { %211 = vmatpush2.msra.mxu0 %v114_v4  ;;  %280 = vmatpush2.msra.mxu1 %v120_v23 }
  0x37   :  { %212 = vmatprep.subr.mxu0 %v111_v6  ;;  %281 = vmatprep.subr.mxu1 %v117_v24 }
  0x38   :  { %213 = vmatpush2.msra.mxu0 %v110_v8  ;;  %334 = vmatprep.mubr.msk.f32.mxu1 %vm152_vm0, %v430_v45 }
  0x39   :  { %214 = vmatprep.subr.mxu0 %v107_v10  ;;  %282 = vmatpush2.msra.mxu1 %v116_v25 }
  0x3a   :  { %215 = vmatpush2.msra.mxu0 %v106_v12  ;;  %283 = vmatprep.subr.mxu1 %v113_v26 }
  0x3b   :  { %216 = vmatprep.subr.mxu0 %v103_v14  ;;  %284 = vmatpush2.msra.mxu1 %v112_v27 }
  0x3c   :  { %217 = vmatpush2.msra.mxu0 %v102_v16  ;;  %285 = vmatprep.subr.mxu1 %v109_v28 }
  0x3d   :  { %218 = vmatprep.subr.mxu0 %v99_v18  ;;  %286 = vmatpush2.msra.mxu1 %v108_v29 }
  0x3e   :  { %219 = vmatpush2.msra.mxu0 %v98_v20  ;;  %287 = vmatprep.subr.mxu1 %v105_v30 }
  0x3f   :  { %221 = vmatmul.mubr.f32.vlgmr.msra.gmra.mxu0 %v32_v22  ;;  %288 = vmatpush2.msra.mxu1 %v104_v31 }
  0x40   :  { %289 = vmatprep.subr.mxu1 %v101_v32 }
  0x41   :  { %290 = vmatpush2.msra.mxu1 %v100_v33 }
  0x42   :  { %292 = vmatmul.mubr.f32.vlgmr.msra.gmra.mxu1 %v32_v22 }
  0xff   :  { %v222_v39 = vpop.f32.mrf.mxu0 }
 0x100   :  { %v223_v45 = vadd.f32 %v222_v39, %v135_v44 }
 0x101   :  { %v224_v40 = vpop.f32.mrf.mxu0 }
 0x102   :  { %v225_v41 = vadd.f32 %v224_v40, %v139_v38  ;;  %v335_v46 = vmul.f32 -1.442695, %v223_v45  ;;  %v293_v50 = vpop.f32.mrf.mxu1 }
 0x103   :  { %v294_v58 = vadd.f32 %v293_v50, %v143_v54 }
 0x104   :  { %v336_v42 = vmul.f32 -1.442695, %v225_v41  ;;  %v295_v53 = vpop.f32.mrf.mxu1 }
 0x105   :  { %v296_v56 = vadd.f32 %v295_v53, %v147_v52 }
 0x106   :  { %341 = vpow2.f32 %v336_v42 }
 0x107   :  { %343 = vpow2.f32 %v335_v46 }
 0x113   :  { %v342_v47 = vpop.eup %341 }
 0x114   :  { %v305_v48 = vadd.f32 1.0, %v342_v47  ;;  %v344_v55 = vpop.eup %343 }
 0x115   :  { %v304_v60 = vadd.f32 1.0, %v344_v55 }
 0x116   :  { %345 = vrcp.f32 %v305_v48 }
 0x123   :  { %v346_v57 = vpop.eup %345 }
 0x124   :  { %v310_v59 = vmul.f32 %v346_v57, %v296_v56 }
 0x126   :  { %v311_v61 = vadd.f32 %v310_v59, %v294_v58 }
 0x128   :  { %347 = vtanh.f32 %v311_v61 }
 0x129   :  { %349 = vrcp.f32 %v304_v60 }
 0x135   :  { %v348_v63 = vpop.eup %347 }
 0x136   :  { %v314_v0 = vsub.f32 %v313_v62, %v348_v63  ;;  %v350_v1 = vpop.eup %349 }
 0x138   :  { %v315_v2 = vmul.f32 %v350_v1, %v314_v0 }
 0x13a   :  { %v316_v3 = vadd.f32 %v348_v63, %v315_v2 }
 0x13c   :  { %317 = vst [vmem:[#allocation5] sm:$0xff] %v316_v3 }
 0x13d   :  { %382 = shalt.err (!%p379_p9)
}
 0x13e   :  { %327 = dma.vmem_to_hbm [thread:$0]  %s325_s28, 128, %s452_s4, [#allocation4]  }
 0x13f   :  { %393 = dma.done.wait [#allocation4], 128  }
 0x140   :  { %394 = vsyncadd [#allocation4], 4294967168 }
 0x141   :  { %331 = vsyncpa [#allocation3], 1 }
 0x142   :  { %332 = vsyncpa [#allocation4], 1 }

</bundles_post_ra>
